<compile_context>
chip_gen: v7x
topology: tpu7x:2x2x1
jax: 0.10.0
libtpu: 0.0.40
codegen_flags: <defaults>
</compile_context>

<pallas_src>
import jax
import jax.numpy as jnp
from jax.experimental import pallas as pl
from jax.experimental.pallas import tpu as pltpu

# ---- model hyper-params (compile-time constants) ----
D_MODEL = 32
N_HEADS = 4
D_HEAD = D_MODEL // N_HEADS
D_FF = 64
LN_EPS = 1e-5


def _layer_norm(v, g, b):
    mu = jnp.mean(v, axis=-1, keepdims=True)
    var = jnp.mean((v - mu) ** 2, axis=-1, keepdims=True)
    return (v - mu) * jax.lax.rsqrt(var + LN_EPS) * g + b


def encoder_layer_kernel(x_ref, mask_ref, w_attn_ref, w1_ref, w2_ref,
                         vec_ref, bff1_ref, out_ref):
    # Shapes (all static at trace time):
    #   x_ref:      (TB*S, D)     mask_ref: (TB, 1, S)
    #   w_attn_ref: (4, D, D)     w1_ref: (D, D_FF)   w2_ref: (D_FF, D)
    #   vec_ref:    (9, D)  rows = [g1, b1, bq, bk, bv, bo, g2, b2, b_ff2]
    #   bff1_ref:   (1, D_FF)
    TB, _, S = mask_ref.shape
    R, D = x_ref.shape                      # R = TB * S

    x = x_ref[...]                          # (R, D)
    V = vec_ref[...]                        # (9, D); static slices below are free
    g1, b1 = V[0:1], V[1:2]
    bq, bk, bv, bo = V[2:3], V[3:4], V[4:5], V[5:6]
    g2, b2 = V[6:7], V[7:8]
    b_ff2 = V[8:9]
    b_ff1 = bff1_ref[...]                   # (1, D_FF)

    # ---- sublayer 0: pre-norm + multi-head self-attention + residual ----
    xn = _layer_norm(x, g1, b1)

    wq = w_attn_ref[0]
    wk = w_attn_ref[1]
    wv = w_attn_ref[2]
    wo = w_attn_ref[3]

    scale = jnp.float32(1.0 / (D_HEAD ** 0.5))
    # Fold the 1/sqrt(d_k) scale into q once (scale*(q@k^T) == (scale*q)@k^T).
    q = (jnp.dot(xn, wq, preferred_element_type=jnp.float32) + bq) * scale
    k = jnp.dot(xn, wk, preferred_element_type=jnp.float32) + bk
    v = jnp.dot(xn, wv, preferred_element_type=jnp.float32) + bv

    # Split the row axis back into (TB, S) -- layout preserving (lane dim kept).
    q3 = q.reshape(TB, S, D)
    k3 = k.reshape(TB, S, D)
    v3 = v.reshape(TB, S, D)

    # Hoisted additive mask bias, broadcast once over the query axis.
    bias = jnp.where(mask_ref[...] == 0.0, jnp.float32(-1e9), jnp.float32(0.0))
    bias = jnp.broadcast_to(bias, (TB, S, S))

    attn = None
    for h in range(N_HEADS):                # static, tiny head loop
        sl = slice(h * D_HEAD, (h + 1) * D_HEAD)
        # TB-batched QK^T for this head: (TB, S, S)
        s_hd = jnp.einsum("bqd,bkd->bqk", q3[:, :, sl], k3[:, :, sl],
                          preferred_element_type=jnp.float32) + bias
        m = jnp.max(s_hd, axis=-1, keepdims=True)
        p = jnp.exp(s_hd - m)
        denom = jnp.sum(p, axis=-1, keepdims=True)
        p = p * pl.reciprocal(denom, approx=True)        # EUP, not VALU divide
        # TB-batched PV: (TB, S, D_HEAD)
        o_h = jnp.einsum("bqk,bkd->bqd", p, v3[:, :, sl],
                         preferred_element_type=jnp.float32)
        # concat(heads) @ Wo == sum_h head_h @ Wo[rows of head h] -> no concat.
        contrib = jnp.dot(o_h.reshape(R, D_HEAD), wo[sl, :],
                          preferred_element_type=jnp.float32)
        attn = contrib if attn is None else attn + contrib

    x1 = x + attn + bo                      # residual (dropout = identity)

    # ---- sublayer 1: pre-norm + positionwise FFN + residual ----
    xn2 = _layer_norm(x1, g2, b2)
    h1 = jnp.dot(xn2, w1_ref[...], preferred_element_type=jnp.float32) + b_ff1
    h1 = jnp.maximum(h1, 0.0)
    ffn = jnp.dot(h1, w2_ref[...], preferred_element_type=jnp.float32) + b_ff2
    out_ref[...] = (x1 + ffn).astype(out_ref.dtype)


def _choose_tb(B, max_tb=32):
    """Largest divisor of B that is <= max_tb while keeping >= 2 grid steps."""
    best = 1
    for tb in range(1, min(B, max_tb) + 1):
        if B % tb == 0 and B // tb >= 2:
            best = tb
    return best


def encoder_layer(x, mask, params, *, max_tb=32):
    (g1, b1, wq, bq, wk, bk, wv, bv, wo, bo, g2, b2, w1, bw1, w2, bw2) = params
    B, S, D = x.shape
    assert D == D_MODEL

    # Pack 16 parameter tensors into 5 slabs (fewer, larger DMAs).
    w_attn = jnp.stack([wq, wk, wv, wo], axis=0)                       # (4, D, D)
    vec = jnp.concatenate([g1, b1, bq, bk, bv, bo, g2, b2, bw2], axis=0)  # (9, D)

    TB = _choose_tb(B, max_tb)
    grid = (B // TB,)
    x_flat = x.reshape(B * S, D)            # free metadata reshape in XLA

    full = lambda shape: pl.BlockSpec(shape, lambda b: (0,) * len(shape))
    out = pl.pallas_call(
        encoder_layer_kernel,
        out_shape=jax.ShapeDtypeStruct((B * S, D), x.dtype),
        grid=grid,
        in_specs=[
            pl.BlockSpec((TB * S, D), lambda b: (b, 0)),     # x rows (mult. of 8)
            pl.BlockSpec((TB, 1, S), lambda b: (b, 0, 0)),   # mask
            full((4, D, D)),                                 # Wq/Wk/Wv/Wo slab
            full((D, D_FF)),                                 # W1
            full((D_FF, D)),                                 # W2
            full((9, D)),                                    # gammas/betas/biases
            full((1, D_FF)),                                 # FFN hidden bias
        ],
        out_specs=pl.BlockSpec((TB * S, D), lambda b: (b, 0)),
        compiler_params=pltpu.CompilerParams(
            dimension_semantics=("parallel",)),
    )(x_flat, mask, w_attn, w1, w2, vec, bw1)
    return out.reshape(B, S, D)


# ---------------- pure-JAX reference (for correctness check) ----------------
def encoder_layer_ref(x, mask, params):
    (g1, b1, wq, bq, wk, bk, wv, bv, wo, bo, g2, b2, w1, bw1, w2, bw2) = params

    def ln(v, g, b):
        mu = v.mean(-1, keepdims=True)
        var = ((v - mu) ** 2).mean(-1, keepdims=True)
        return (v - mu) / jnp.sqrt(var + LN_EPS) * g + b

    B, S, D = x.shape
    xn = ln(x, g1[0], b1[0])
    q = xn @ wq + bq[0]
    k = xn @ wk + bk[0]
    v = xn @ wv + bv[0]
    qh = q.reshape(B, S, N_HEADS, D_HEAD).transpose(0, 2, 1, 3)
    kh = k.reshape(B, S, N_HEADS, D_HEAD).transpose(0, 2, 1, 3)
    vh = v.reshape(B, S, N_HEADS, D_HEAD).transpose(0, 2, 1, 3)
    scores = jnp.einsum("bhqd,bhkd->bhqk", qh, kh) / jnp.sqrt(float(D_HEAD))
    scores = jnp.where(mask[:, None, :, :] == 0.0, -1e9, scores)
    p = jax.nn.softmax(scores, axis=-1)
    o = jnp.einsum("bhqk,bhkd->bhqd", p, vh).transpose(0, 2, 1, 3).reshape(B, S, D)
    x1 = x + (o @ wo + bo[0])
    xn2 = ln(x1, g2[0], b2[0])
    ffn = jnp.maximum(xn2 @ w1 + bw1[0], 0.0) @ w2 + bw2[0]
    return x1 + ffn


def make_params(key):
    ks = jax.random.split(key, 8)
    s = 0.05
    g1 = jnp.ones((1, D_MODEL), jnp.float32)
    b1 = jnp.zeros((1, D_MODEL), jnp.float32)
    g2 = jnp.ones((1, D_MODEL), jnp.float32)
    b2 = jnp.zeros((1, D_MODEL), jnp.float32)
    wq = s * jax.random.normal(ks[0], (D_MODEL, D_MODEL), jnp.float32)
    wk = s * jax.random.normal(ks[1], (D_MODEL, D_MODEL), jnp.float32)
    wv = s * jax.random.normal(ks[2], (D_MODEL, D_MODEL), jnp.float32)
    wo = s * jax.random.normal(ks[3], (D_MODEL, D_MODEL), jnp.float32)
    bq = s * jax.random.normal(ks[4], (1, D_MODEL), jnp.float32)
    bk = jnp.zeros((1, D_MODEL), jnp.float32)
    bv = jnp.zeros((1, D_MODEL), jnp.float32)
    bo = s * jax.random.normal(ks[5], (1, D_MODEL), jnp.float32)
    w1 = s * jax.random.normal(ks[6], (D_MODEL, D_FF), jnp.float32)
    bw1 = jnp.zeros((1, D_FF), jnp.float32)
    w2 = s * jax.random.normal(ks[7], (D_FF, D_MODEL), jnp.float32)
    bw2 = jnp.zeros((1, D_MODEL), jnp.float32)
    return (g1, b1, wq, bq, wk, bk, wv, bv, wo, bo, g2, b2, w1, bw1, w2, bw2)


if __name__ == "__main__":
    key = jax.random.PRNGKey(0)
    kx, kp, kx2 = jax.random.split(key, 3)
    params = make_params(kp)

    # --- case 1: B=2 (TB=1, grid=2) ---
    B, S = 2, 8
    x = jax.random.normal(kx, (B, S, D_MODEL), jnp.float32)
    mask = jnp.ones((B, 1, S), jnp.float32)
    mask = mask.at[1, 0, -2:].set(0.0)      # batch 1 masks the last two keys

    out = encoder_layer(x, mask, params)
    jax.block_until_ready(out)
    ref = encoder_layer_ref(x, mask, params)
    assert out.shape == (B, S, D_MODEL)
    # tolerance loosened slightly vs exact softmax because of approx reciprocal
    assert jnp.allclose(out, ref, atol=2e-3, rtol=2e-3), "mismatch vs reference (B=2)"

    # --- case 2: B=8 exercises the multi-element (TB=4, grid=2) batching path ---
    B2 = 8
    x2 = jax.random.normal(kx2, (B2, S, D_MODEL), jnp.float32)
    mask2 = jnp.ones((B2, 1, S), jnp.float32)
    mask2 = mask2.at[3, 0, 5:].set(0.0)
    mask2 = mask2.at[6, 0, :2].set(0.0)

    out2 = encoder_layer(x2, mask2, params)
    jax.block_until_ready(out2)
    ref2 = encoder_layer_ref(x2, mask2, params)
    assert out2.shape == (B2, S, D_MODEL)
    assert jnp.allclose(out2, ref2, atol=2e-3, rtol=2e-3), "mismatch vs reference (B=8)"

    # TODO(synk): dropout inside SublayerConnection is identity here (eval mode);
    # training-mode dropout would need pltpu.prng_* inside the kernel.
    print("KERNEL_OK")
</pallas_src>

<mosaic_0001>
module attributes {stable_mosaic.version = 11 : i64} {
  func.func @encoder_layer_kernel(%arg0: i32, %arg1: memref<8x32xf32, #tpu.memory_space<vmem>>, %arg2: memref<1x1x8xf32, #tpu.memory_space<vmem>>, %arg3: memref<4x32x32xf32, #tpu.memory_space<vmem>>, %arg4: memref<32x64xf32, #tpu.memory_space<vmem>>, %arg5: memref<64x32xf32, #tpu.memory_space<vmem>>, %arg6: memref<9x32xf32, #tpu.memory_space<vmem>>, %arg7: memref<1x64xf32, #tpu.memory_space<vmem>>, %arg8: memref<8x32xf32, #tpu.memory_space<vmem>>) attributes {dimension_semantics = [#tpu.dimension_semantics<parallel>], iteration_bounds = array<i64: 2>, scalar_prefetch = 0 : i64, scratch_operands = 0 : i64, tpu.core_type = #tpu.core_type<tc>, window_params = [{transform_indices = @transform_0, window_bounds = array<i64: 8, 32>}, {transform_indices = @transform_1, window_bounds = array<i64: 1, 1, 8>}, {pipeline_mode = #tpu.pipeline_mode<synchronous>, transform_indices = @transform_2, window_bounds = array<i64: 4, 32, 32>}, {pipeline_mode = #tpu.pipeline_mode<synchronous>, transform_indices = @transform_3, window_bounds = array<i64: 32, 64>}, {pipeline_mode = #tpu.pipeline_mode<synchronous>, transform_indices = @transform_4, window_bounds = array<i64: 64, 32>}, {pipeline_mode = #tpu.pipeline_mode<synchronous>, transform_indices = @transform_5, window_bounds = array<i64: 9, 32>}, {pipeline_mode = #tpu.pipeline_mode<synchronous>, transform_indices = @transform_6, window_bounds = array<i64: 1, 64>}, {transform_indices = @transform_7, window_bounds = array<i64: 8, 32>}]} {
    %c0 = arith.constant 0 : index
    %c0_0 = arith.constant 0 : index
    %0 = vector.load %arg1[%c0, %c0_0] : memref<8x32xf32, #tpu.memory_space<vmem>>, vector<8x32xf32>
    %c0_1 = arith.constant 0 : index
    %c0_2 = arith.constant 0 : index
    %1 = vector.load %arg6[%c0_1, %c0_2] : memref<9x32xf32, #tpu.memory_space<vmem>>, vector<9x32xf32>
    %2 = vector.extract_strided_slice %1 {offsets = [0, 0], sizes = [1, 32], strides = [1, 1]} : vector<9x32xf32> to vector<1x32xf32>
    %3 = vector.extract_strided_slice %1 {offsets = [1, 0], sizes = [1, 32], strides = [1, 1]} : vector<9x32xf32> to vector<1x32xf32>
    %4 = vector.extract_strided_slice %1 {offsets = [2, 0], sizes = [1, 32], strides = [1, 1]} : vector<9x32xf32> to vector<1x32xf32>
    %5 = vector.extract_strided_slice %1 {offsets = [3, 0], sizes = [1, 32], strides = [1, 1]} : vector<9x32xf32> to vector<1x32xf32>
    %6 = vector.extract_strided_slice %1 {offsets = [4, 0], sizes = [1, 32], strides = [1, 1]} : vector<9x32xf32> to vector<1x32xf32>
    %7 = vector.extract_strided_slice %1 {offsets = [5, 0], sizes = [1, 32], strides = [1, 1]} : vector<9x32xf32> to vector<1x32xf32>
    %8 = vector.extract_strided_slice %1 {offsets = [6, 0], sizes = [1, 32], strides = [1, 1]} : vector<9x32xf32> to vector<1x32xf32>
    %9 = vector.extract_strided_slice %1 {offsets = [7, 0], sizes = [1, 32], strides = [1, 1]} : vector<9x32xf32> to vector<1x32xf32>
    %10 = vector.extract_strided_slice %1 {offsets = [8, 0], sizes = [1, 32], strides = [1, 1]} : vector<9x32xf32> to vector<1x32xf32>
    %c0_3 = arith.constant 0 : index
    %c0_4 = arith.constant 0 : index
    %11 = vector.load %arg7[%c0_3, %c0_4] : memref<1x64xf32, #tpu.memory_space<vmem>>, vector<1x64xf32>
    %cst = arith.constant dense<0.000000e+00> : vector<8xf32>
    %12 = vector.multi_reduction <add>, %0, %cst [1] : vector<8x32xf32> to vector<8xf32>
    %13 = vector.shape_cast %12 : vector<8xf32> to vector<8x1xf32>
    %cst_5 = arith.constant 3.200000e+01 : f32
    %14 = vector.broadcast %cst_5 : f32 to vector<8x1xf32>
    %15 = arith.divf %13, %14 : vector<8x1xf32>
    %16 = vector.broadcast %15 : vector<8x1xf32> to vector<8x32xf32>
    %17 = arith.subf %0, %16 : vector<8x32xf32>
    %18 = arith.mulf %17, %17 : vector<8x32xf32>
    %cst_6 = arith.constant dense<0.000000e+00> : vector<8xf32>
    %19 = vector.multi_reduction <add>, %18, %cst_6 [1] : vector<8x32xf32> to vector<8xf32>
    %20 = vector.shape_cast %19 : vector<8xf32> to vector<8x1xf32>
    %cst_7 = arith.constant 3.200000e+01 : f32
    %21 = vector.broadcast %cst_7 : f32 to vector<8x1xf32>
    %22 = arith.divf %20, %21 : vector<8x1xf32>
    %23 = vector.broadcast %15 : vector<8x1xf32> to vector<8x32xf32>
    %24 = arith.subf %0, %23 : vector<8x32xf32>
    %cst_8 = arith.constant 9.99999974E-6 : f32
    %25 = vector.broadcast %cst_8 : f32 to vector<8x1xf32>
    %26 = arith.addf %22, %25 : vector<8x1xf32>
    %27 = math.rsqrt %26 : vector<8x1xf32>
    %28 = vector.broadcast %27 : vector<8x1xf32> to vector<8x32xf32>
    %29 = arith.mulf %24, %28 : vector<8x32xf32>
    %30 = vector.broadcast %2 : vector<1x32xf32> to vector<8x32xf32>
    %31 = arith.mulf %29, %30 : vector<8x32xf32>
    %32 = vector.broadcast %3 : vector<1x32xf32> to vector<8x32xf32>
    %33 = arith.addf %31, %32 : vector<8x32xf32>
    %c0_9 = arith.constant 0 : index
    %c0_10 = arith.constant 0 : index
    %c0_11 = arith.constant 0 : index
    %34 = vector.load %arg3[%c0_9, %c0_10, %c0_11] : memref<4x32x32xf32, #tpu.memory_space<vmem>>, vector<1x32x32xf32>
    %35 = vector.shape_cast %34 : vector<1x32x32xf32> to vector<32x32xf32>
    %c1 = arith.constant 1 : index
    %c0_12 = arith.constant 0 : index
    %c0_13 = arith.constant 0 : index
    %36 = vector.load %arg3[%c1, %c0_12, %c0_13] : memref<4x32x32xf32, #tpu.memory_space<vmem>>, vector<1x32x32xf32>
    %37 = vector.shape_cast %36 : vector<1x32x32xf32> to vector<32x32xf32>
    %c2 = arith.constant 2 : index
    %c0_14 = arith.constant 0 : index
    %c0_15 = arith.constant 0 : index
    %38 = vector.load %arg3[%c2, %c0_14, %c0_15] : memref<4x32x32xf32, #tpu.memory_space<vmem>>, vector<1x32x32xf32>
    %39 = vector.shape_cast %38 : vector<1x32x32xf32> to vector<32x32xf32>
    %c3 = arith.constant 3 : index
    %c0_16 = arith.constant 0 : index
    %c0_17 = arith.constant 0 : index
    %40 = vector.load %arg3[%c3, %c0_16, %c0_17] : memref<4x32x32xf32, #tpu.memory_space<vmem>>, vector<1x32x32xf32>
    %41 = vector.shape_cast %40 : vector<1x32x32xf32> to vector<32x32xf32>
    %cst_18 = arith.constant dense<0.000000e+00> : vector<8x32xf32>
    %42 = tpu.matmul %33, %35, %cst_18 {dimension_numbers = #tpu.dot_dimension_numbers<[1], [0], [0], [1], [0, 0, 1, 1], [], []>} : vector<8x32xf32>, vector<32x32xf32>, vector<8x32xf32> -> vector<8x32xf32>
    %43 = vector.broadcast %4 : vector<1x32xf32> to vector<8x32xf32>
    %44 = arith.addf %42, %43 : vector<8x32xf32>
    %cst_19 = arith.constant 0.353553385 : f32
    %45 = vector.broadcast %cst_19 : f32 to vector<8x32xf32>
    %46 = arith.mulf %44, %45 : vector<8x32xf32>
    %cst_20 = arith.constant dense<0.000000e+00> : vector<8x32xf32>
    %47 = tpu.matmul %33, %37, %cst_20 {dimension_numbers = #tpu.dot_dimension_numbers<[1], [0], [0], [1], [0, 0, 1, 1], [], []>} : vector<8x32xf32>, vector<32x32xf32>, vector<8x32xf32> -> vector<8x32xf32>
    %48 = vector.broadcast %5 : vector<1x32xf32> to vector<8x32xf32>
    %49 = arith.addf %47, %48 : vector<8x32xf32>
    %cst_21 = arith.constant dense<0.000000e+00> : vector<8x32xf32>
    %50 = tpu.matmul %33, %39, %cst_21 {dimension_numbers = #tpu.dot_dimension_numbers<[1], [0], [0], [1], [0, 0, 1, 1], [], []>} : vector<8x32xf32>, vector<32x32xf32>, vector<8x32xf32> -> vector<8x32xf32>
    %51 = vector.broadcast %6 : vector<1x32xf32> to vector<8x32xf32>
    %52 = arith.addf %50, %51 : vector<8x32xf32>
    %53 = vector.shape_cast %46 : vector<8x32xf32> to vector<1x8x32xf32>
    %54 = vector.shape_cast %49 : vector<8x32xf32> to vector<1x8x32xf32>
    %55 = vector.shape_cast %52 : vector<8x32xf32> to vector<1x8x32xf32>
    %c0_22 = arith.constant 0 : index
    %c0_23 = arith.constant 0 : index
    %c0_24 = arith.constant 0 : index
    %56 = vector.load %arg2[%c0_22, %c0_23, %c0_24] : memref<1x1x8xf32, #tpu.memory_space<vmem>>, vector<1x1x8xf32>
    %cst_25 = arith.constant 0.000000e+00 : f32
    %57 = vector.broadcast %cst_25 : f32 to vector<1x1x8xf32>
    %58 = arith.cmpf oeq, %56, %57 : vector<1x1x8xf32>
    %cst_26 = arith.constant -1.000000e+09 : f32
    %cst_27 = arith.constant 0.000000e+00 : f32
    %59 = vector.broadcast %cst_26 : f32 to vector<1x1x8xf32>
    %60 = vector.broadcast %cst_27 : f32 to vector<1x1x8xf32>
    %61 = arith.select %58, %59, %60 : vector<1x1x8xi1>, vector<1x1x8xf32>
    %62 = vector.shape_cast %61 : vector<1x1x8xf32> to vector<1x1x8xf32>
    %63 = vector.broadcast %62 : vector<1x1x8xf32> to vector<1x8x8xf32>
    %64 = vector.extract_strided_slice %53 {offsets = [0, 0, 0], sizes = [1, 8, 8], strides = [1, 1, 1]} : vector<1x8x32xf32> to vector<1x8x8xf32>
    %65 = vector.extract_strided_slice %54 {offsets = [0, 0, 0], sizes = [1, 8, 8], strides = [1, 1, 1]} : vector<1x8x32xf32> to vector<1x8x8xf32>
    "tpu.trace_start"() <{level = 10 : i32, message = "bqd,bkd->bqk"}> : () -> ()
    %cst_28 = arith.constant dense<0.000000e+00> : vector<1x8x8xf32>
    %66 = tpu.matmul %64, %65, %cst_28 {dimension_numbers = #tpu.dot_dimension_numbers<[2], [2], [1], [1], [0, 0, 0, 1, 1, 1], [0], [0]>} : vector<1x8x8xf32>, vector<1x8x8xf32>, vector<1x8x8xf32> -> vector<1x8x8xf32>
    "tpu.trace_stop"() : () -> ()
    %67 = arith.addf %66, %63 : vector<1x8x8xf32>
    %cst_29 = arith.constant dense<0xFF800000> : vector<1x8xf32>
    %68 = vector.multi_reduction <maximumf>, %67, %cst_29 [2] : vector<1x8x8xf32> to vector<1x8xf32>
    %69 = vector.shape_cast %68 : vector<1x8xf32> to vector<1x8x1xf32>
    %70 = vector.broadcast %69 : vector<1x8x1xf32> to vector<1x8x8xf32>
    %71 = arith.subf %67, %70 : vector<1x8x8xf32>
    %72 = math.exp %71 : vector<1x8x8xf32>
    %cst_30 = arith.constant dense<0.000000e+00> : vector<1x8xf32>
    %73 = vector.multi_reduction <add>, %72, %cst_30 [2] : vector<1x8x8xf32> to vector<1x8xf32>
    %74 = vector.shape_cast %73 : vector<1x8xf32> to vector<1x8x1xf32>
    %75 = tpu.reciprocal %74 {approx = true} : vector<1x8x1xf32> -> vector<1x8x1xf32>
    %76 = vector.broadcast %75 : vector<1x8x1xf32> to vector<1x8x8xf32>
    %77 = arith.mulf %72, %76 : vector<1x8x8xf32>
    %78 = vector.extract_strided_slice %55 {offsets = [0, 0, 0], sizes = [1, 8, 8], strides = [1, 1, 1]} : vector<1x8x32xf32> to vector<1x8x8xf32>
    "tpu.trace_start"() <{level = 10 : i32, message = "bqk,bkd->bqd"}> : () -> ()
    %cst_31 = arith.constant dense<0.000000e+00> : vector<1x8x8xf32>
    %79 = tpu.matmul %77, %78, %cst_31 {dimension_numbers = #tpu.dot_dimension_numbers<[2], [1], [1], [2], [0, 0, 0, 1, 1, 2], [0], [0]>} : vector<1x8x8xf32>, vector<1x8x8xf32>, vector<1x8x8xf32> -> vector<1x8x8xf32>
    "tpu.trace_stop"() : () -> ()
    %80 = vector.shape_cast %79 : vector<1x8x8xf32> to vector<8x8xf32>
    %81 = vector.extract_strided_slice %41 {offsets = [0, 0], sizes = [8, 32], strides = [1, 1]} : vector<32x32xf32> to vector<8x32xf32>
    %cst_32 = arith.constant dense<0.000000e+00> : vector<8x32xf32>
    %82 = tpu.matmul %80, %81, %cst_32 {dimension_numbers = #tpu.dot_dimension_numbers<[1], [0], [0], [1], [0, 0, 1, 1], [], []>} : vector<8x8xf32>, vector<8x32xf32>, vector<8x32xf32> -> vector<8x32xf32>
    %83 = vector.extract_strided_slice %53 {offsets = [0, 0, 8], sizes = [1, 8, 8], strides = [1, 1, 1]} : vector<1x8x32xf32> to vector<1x8x8xf32>
    %84 = vector.extract_strided_slice %54 {offsets = [0, 0, 8], sizes = [1, 8, 8], strides = [1, 1, 1]} : vector<1x8x32xf32> to vector<1x8x8xf32>
    "tpu.trace_start"() <{level = 10 : i32, message = "bqd,bkd->bqk"}> : () -> ()
    %cst_33 = arith.constant dense<0.000000e+00> : vector<1x8x8xf32>
    %85 = tpu.matmul %83, %84, %cst_33 {dimension_numbers = #tpu.dot_dimension_numbers<[2], [2], [1], [1], [0, 0, 0, 1, 1, 1], [0], [0]>} : vector<1x8x8xf32>, vector<1x8x8xf32>, vector<1x8x8xf32> -> vector<1x8x8xf32>
    "tpu.trace_stop"() : () -> ()
    %86 = arith.addf %85, %63 : vector<1x8x8xf32>
    %cst_34 = arith.constant dense<0xFF800000> : vector<1x8xf32>
    %87 = vector.multi_reduction <maximumf>, %86, %cst_34 [2] : vector<1x8x8xf32> to vector<1x8xf32>
    %88 = vector.shape_cast %87 : vector<1x8xf32> to vector<1x8x1xf32>
    %89 = vector.broadcast %88 : vector<1x8x1xf32> to vector<1x8x8xf32>
    %90 = arith.subf %86, %89 : vector<1x8x8xf32>
    %91 = math.exp %90 : vector<1x8x8xf32>
    %cst_35 = arith.constant dense<0.000000e+00> : vector<1x8xf32>
    %92 = vector.multi_reduction <add>, %91, %cst_35 [2] : vector<1x8x8xf32> to vector<1x8xf32>
    %93 = vector.shape_cast %92 : vector<1x8xf32> to vector<1x8x1xf32>
    %94 = tpu.reciprocal %93 {approx = true} : vector<1x8x1xf32> -> vector<1x8x1xf32>
    %95 = vector.broadcast %94 : vector<1x8x1xf32> to vector<1x8x8xf32>
    %96 = arith.mulf %91, %95 : vector<1x8x8xf32>
    %97 = vector.extract_strided_slice %55 {offsets = [0, 0, 8], sizes = [1, 8, 8], strides = [1, 1, 1]} : vector<1x8x32xf32> to vector<1x8x8xf32>
    "tpu.trace_start"() <{level = 10 : i32, message = "bqk,bkd->bqd"}> : () -> ()
    %cst_36 = arith.constant dense<0.000000e+00> : vector<1x8x8xf32>
    %98 = tpu.matmul %96, %97, %cst_36 {dimension_numbers = #tpu.dot_dimension_numbers<[2], [1], [1], [2], [0, 0, 0, 1, 1, 2], [0], [0]>} : vector<1x8x8xf32>, vector<1x8x8xf32>, vector<1x8x8xf32> -> vector<1x8x8xf32>
    "tpu.trace_stop"() : () -> ()
    %99 = vector.shape_cast %98 : vector<1x8x8xf32> to vector<8x8xf32>
    %100 = vector.extract_strided_slice %41 {offsets = [8, 0], sizes = [8, 32], strides = [1, 1]} : vector<32x32xf32> to vector<8x32xf32>
    %cst_37 = arith.constant dense<0.000000e+00> : vector<8x32xf32>
    %101 = tpu.matmul %99, %100, %cst_37 {dimension_numbers = #tpu.dot_dimension_numbers<[1], [0], [0], [1], [0, 0, 1, 1], [], []>} : vector<8x8xf32>, vector<8x32xf32>, vector<8x32xf32> -> vector<8x32xf32>
    %102 = arith.addf %82, %101 : vector<8x32xf32>
    %103 = vector.extract_strided_slice %53 {offsets = [0, 0, 16], sizes = [1, 8, 8], strides = [1, 1, 1]} : vector<1x8x32xf32> to vector<1x8x8xf32>
    %104 = vector.extract_strided_slice %54 {offsets = [0, 0, 16], sizes = [1, 8, 8], strides = [1, 1, 1]} : vector<1x8x32xf32> to vector<1x8x8xf32>
    "tpu.trace_start"() <{level = 10 : i32, message = "bqd,bkd->bqk"}> : () -> ()
    %cst_38 = arith.constant dense<0.000000e+00> : vector<1x8x8xf32>
    %105 = tpu.matmul %103, %104, %cst_38 {dimension_numbers = #tpu.dot_dimension_numbers<[2], [2], [1], [1], [0, 0, 0, 1, 1, 1], [0], [0]>} : vector<1x8x8xf32>, vector<1x8x8xf32>, vector<1x8x8xf32> -> vector<1x8x8xf32>
    "tpu.trace_stop"() : () -> ()
    %106 = arith.addf %105, %63 : vector<1x8x8xf32>
    %cst_39 = arith.constant dense<0xFF800000> : vector<1x8xf32>
    %107 = vector.multi_reduction <maximumf>, %106, %cst_39 [2] : vector<1x8x8xf32> to vector<1x8xf32>
    %108 = vector.shape_cast %107 : vector<1x8xf32> to vector<1x8x1xf32>
    %109 = vector.broadcast %108 : vector<1x8x1xf32> to vector<1x8x8xf32>
    %110 = arith.subf %106, %109 : vector<1x8x8xf32>
    %111 = math.exp %110 : vector<1x8x8xf32>
    %cst_40 = arith.constant dense<0.000000e+00> : vector<1x8xf32>
    %112 = vector.multi_reduction <add>, %111, %cst_40 [2] : vector<1x8x8xf32> to vector<1x8xf32>
    %113 = vector.shape_cast %112 : vector<1x8xf32> to vector<1x8x1xf32>
    %114 = tpu.reciprocal %113 {approx = true} : vector<1x8x1xf32> -> vector<1x8x1xf32>
    %115 = vector.broadcast %114 : vector<1x8x1xf32> to vector<1x8x8xf32>
    %116 = arith.mulf %111, %115 : vector<1x8x8xf32>
    %117 = vector.extract_strided_slice %55 {offsets = [0, 0, 16], sizes = [1, 8, 8], strides = [1, 1, 1]} : vector<1x8x32xf32> to vector<1x8x8xf32>
    "tpu.trace_start"() <{level = 10 : i32, message = "bqk,bkd->bqd"}> : () -> ()
    %cst_41 = arith.constant dense<0.000000e+00> : vector<1x8x8xf32>
    %118 = tpu.matmul %116, %117, %cst_41 {dimension_numbers = #tpu.dot_dimension_numbers<[2], [1], [1], [2], [0, 0, 0, 1, 1, 2], [0], [0]>} : vector<1x8x8xf32>, vector<1x8x8xf32>, vector<1x8x8xf32> -> vector<1x8x8xf32>
    "tpu.trace_stop"() : () -> ()
    %119 = vector.shape_cast %118 : vector<1x8x8xf32> to vector<8x8xf32>
    %120 = vector.extract_strided_slice %41 {offsets = [16, 0], sizes = [8, 32], strides = [1, 1]} : vector<32x32xf32> to vector<8x32xf32>
    %cst_42 = arith.constant dense<0.000000e+00> : vector<8x32xf32>
    %121 = tpu.matmul %119, %120, %cst_42 {dimension_numbers = #tpu.dot_dimension_numbers<[1], [0], [0], [1], [0, 0, 1, 1], [], []>} : vector<8x8xf32>, vector<8x32xf32>, vector<8x32xf32> -> vector<8x32xf32>
    %122 = arith.addf %102, %121 : vector<8x32xf32>
    %123 = vector.extract_strided_slice %53 {offsets = [0, 0, 24], sizes = [1, 8, 8], strides = [1, 1, 1]} : vector<1x8x32xf32> to vector<1x8x8xf32>
    %124 = vector.extract_strided_slice %54 {offsets = [0, 0, 24], sizes = [1, 8, 8], strides = [1, 1, 1]} : vector<1x8x32xf32> to vector<1x8x8xf32>
    "tpu.trace_start"() <{level = 10 : i32, message = "bqd,bkd->bqk"}> : () -> ()
    %cst_43 = arith.constant dense<0.000000e+00> : vector<1x8x8xf32>
    %125 = tpu.matmul %123, %124, %cst_43 {dimension_numbers = #tpu.dot_dimension_numbers<[2], [2], [1], [1], [0, 0, 0, 1, 1, 1], [0], [0]>} : vector<1x8x8xf32>, vector<1x8x8xf32>, vector<1x8x8xf32> -> vector<1x8x8xf32>
    "tpu.trace_stop"() : () -> ()
    %126 = arith.addf %125, %63 : vector<1x8x8xf32>
    %cst_44 = arith.constant dense<0xFF800000> : vector<1x8xf32>
    %127 = vector.multi_reduction <maximumf>, %126, %cst_44 [2] : vector<1x8x8xf32> to vector<1x8xf32>
    %128 = vector.shape_cast %127 : vector<1x8xf32> to vector<1x8x1xf32>
    %129 = vector.broadcast %128 : vector<1x8x1xf32> to vector<1x8x8xf32>
    %130 = arith.subf %126, %129 : vector<1x8x8xf32>
    %131 = math.exp %130 : vector<1x8x8xf32>
    %cst_45 = arith.constant dense<0.000000e+00> : vector<1x8xf32>
    %132 = vector.multi_reduction <add>, %131, %cst_45 [2] : vector<1x8x8xf32> to vector<1x8xf32>
    %133 = vector.shape_cast %132 : vector<1x8xf32> to vector<1x8x1xf32>
    %134 = tpu.reciprocal %133 {approx = true} : vector<1x8x1xf32> -> vector<1x8x1xf32>
    %135 = vector.broadcast %134 : vector<1x8x1xf32> to vector<1x8x8xf32>
    %136 = arith.mulf %131, %135 : vector<1x8x8xf32>
    %137 = vector.extract_strided_slice %55 {offsets = [0, 0, 24], sizes = [1, 8, 8], strides = [1, 1, 1]} : vector<1x8x32xf32> to vector<1x8x8xf32>
    "tpu.trace_start"() <{level = 10 : i32, message = "bqk,bkd->bqd"}> : () -> ()
    %cst_46 = arith.constant dense<0.000000e+00> : vector<1x8x8xf32>
    %138 = tpu.matmul %136, %137, %cst_46 {dimension_numbers = #tpu.dot_dimension_numbers<[2], [1], [1], [2], [0, 0, 0, 1, 1, 2], [0], [0]>} : vector<1x8x8xf32>, vector<1x8x8xf32>, vector<1x8x8xf32> -> vector<1x8x8xf32>
    "tpu.trace_stop"() : () -> ()
    %139 = vector.shape_cast %138 : vector<1x8x8xf32> to vector<8x8xf32>
    %140 = vector.extract_strided_slice %41 {offsets = [24, 0], sizes = [8, 32], strides = [1, 1]} : vector<32x32xf32> to vector<8x32xf32>
    %cst_47 = arith.constant dense<0.000000e+00> : vector<8x32xf32>
    %141 = tpu.matmul %139, %140, %cst_47 {dimension_numbers = #tpu.dot_dimension_numbers<[1], [0], [0], [1], [0, 0, 1, 1], [], []>} : vector<8x8xf32>, vector<8x32xf32>, vector<8x32xf32> -> vector<8x32xf32>
    %142 = arith.addf %122, %141 : vector<8x32xf32>
    %143 = arith.addf %0, %142 : vector<8x32xf32>
    %144 = vector.broadcast %7 : vector<1x32xf32> to vector<8x32xf32>
    %145 = arith.addf %143, %144 : vector<8x32xf32>
    %cst_48 = arith.constant dense<0.000000e+00> : vector<8xf32>
    %146 = vector.multi_reduction <add>, %145, %cst_48 [1] : vector<8x32xf32> to vector<8xf32>
    %147 = vector.shape_cast %146 : vector<8xf32> to vector<8x1xf32>
    %cst_49 = arith.constant 3.200000e+01 : f32
    %148 = vector.broadcast %cst_49 : f32 to vector<8x1xf32>
    %149 = arith.divf %147, %148 : vector<8x1xf32>
    %150 = vector.broadcast %149 : vector<8x1xf32> to vector<8x32xf32>
    %151 = arith.subf %145, %150 : vector<8x32xf32>
    %152 = arith.mulf %151, %151 : vector<8x32xf32>
    %cst_50 = arith.constant dense<0.000000e+00> : vector<8xf32>
    %153 = vector.multi_reduction <add>, %152, %cst_50 [1] : vector<8x32xf32> to vector<8xf32>
    %154 = vector.shape_cast %153 : vector<8xf32> to vector<8x1xf32>
    %cst_51 = arith.constant 3.200000e+01 : f32
    %155 = vector.broadcast %cst_51 : f32 to vector<8x1xf32>
    %156 = arith.divf %154, %155 : vector<8x1xf32>
    %157 = vector.broadcast %149 : vector<8x1xf32> to vector<8x32xf32>
    %158 = arith.subf %145, %157 : vector<8x32xf32>
    %cst_52 = arith.constant 9.99999974E-6 : f32
    %159 = vector.broadcast %cst_52 : f32 to vector<8x1xf32>
    %160 = arith.addf %156, %159 : vector<8x1xf32>
    %161 = math.rsqrt %160 : vector<8x1xf32>
    %162 = vector.broadcast %161 : vector<8x1xf32> to vector<8x32xf32>
    %163 = arith.mulf %158, %162 : vector<8x32xf32>
    %164 = vector.broadcast %8 : vector<1x32xf32> to vector<8x32xf32>
    %165 = arith.mulf %163, %164 : vector<8x32xf32>
    %166 = vector.broadcast %9 : vector<1x32xf32> to vector<8x32xf32>
    %167 = arith.addf %165, %166 : vector<8x32xf32>
    %c0_53 = arith.constant 0 : index
    %c0_54 = arith.constant 0 : index
    %168 = vector.load %arg4[%c0_53, %c0_54] : memref<32x64xf32, #tpu.memory_space<vmem>>, vector<32x64xf32>
    %cst_55 = arith.constant dense<0.000000e+00> : vector<8x64xf32>
    %169 = tpu.matmul %167, %168, %cst_55 {dimension_numbers = #tpu.dot_dimension_numbers<[1], [0], [0], [1], [0, 0, 1, 1], [], []>} : vector<8x32xf32>, vector<32x64xf32>, vector<8x64xf32> -> vector<8x64xf32>
    %170 = vector.broadcast %11 : vector<1x64xf32> to vector<8x64xf32>
    %171 = arith.addf %169, %170 : vector<8x64xf32>
    %cst_56 = arith.constant 0.000000e+00 : f32
    %172 = vector.broadcast %cst_56 : f32 to vector<8x64xf32>
    %173 = arith.maximumf %171, %172 : vector<8x64xf32>
    %c0_57 = arith.constant 0 : index
    %c0_58 = arith.constant 0 : index
    %174 = vector.load %arg5[%c0_57, %c0_58] : memref<64x32xf32, #tpu.memory_space<vmem>>, vector<64x32xf32>
    %cst_59 = arith.constant dense<0.000000e+00> : vector<8x32xf32>
    %175 = tpu.matmul %173, %174, %cst_59 {dimension_numbers = #tpu.dot_dimension_numbers<[1], [0], [0], [1], [0, 0, 1, 1], [], []>} : vector<8x64xf32>, vector<64x32xf32>, vector<8x32xf32> -> vector<8x32xf32>
    %176 = vector.broadcast %10 : vector<1x32xf32> to vector<8x32xf32>
    %177 = arith.addf %175, %176 : vector<8x32xf32>
    %178 = arith.addf %145, %177 : vector<8x32xf32>
    %c0_60 = arith.constant 0 : index
    %c0_61 = arith.constant 0 : index
    %179 = vector.load %arg8[%c0_60, %c0_61] : memref<8x32xf32, #tpu.memory_space<vmem>>, vector<8x32xf32>
    tpu.vector_store %arg8[%c0_60, %c0_61], %178 {strides = array<i32>} : memref<8x32xf32, #tpu.memory_space<vmem>>, vector<8x32xf32>,
    return
  }
  func.func @transform_0(%arg0: i32) -> (i32, i32) {
    %c0_i32 = arith.constant 0 : i32
    %c0_i32_0 = arith.constant 0 : i32
    return %arg0, %c0_i32 : i32, i32
  }
  func.func @transform_1(%arg0: i32) -> (i32, i32, i32) {
    %c0_i32 = arith.constant 0 : i32
    %c0_i32_0 = arith.constant 0 : i32
    %c0_i32_1 = arith.constant 0 : i32
    return %arg0, %c0_i32, %c0_i32_0 : i32, i32, i32
  }
  func.func @transform_2(%arg0: i32) -> (i32, i32, i32) {
    %c0_i32 = arith.constant 0 : i32
    %c0_i32_0 = arith.constant 0 : i32
    %c0_i32_1 = arith.constant 0 : i32
    %c0_i32_2 = arith.constant 0 : i32
    return %c0_i32, %c0_i32_0, %c0_i32_1 : i32, i32, i32
  }
  func.func @transform_3(%arg0: i32) -> (i32, i32) {
    %c0_i32 = arith.constant 0 : i32
    %c0_i32_0 = arith.constant 0 : i32
    %c0_i32_1 = arith.constant 0 : i32
    return %c0_i32, %c0_i32_0 : i32, i32
  }
  func.func @transform_4(%arg0: i32) -> (i32, i32) {
    %c0_i32 = arith.constant 0 : i32
    %c0_i32_0 = arith.constant 0 : i32
    %c0_i32_1 = arith.constant 0 : i32
    return %c0_i32, %c0_i32_0 : i32, i32
  }
  func.func @transform_5(%arg0: i32) -> (i32, i32) {
    %c0_i32 = arith.constant 0 : i32
    %c0_i32_0 = arith.constant 0 : i32
    %c0_i32_1 = arith.constant 0 : i32
    return %c0_i32, %c0_i32_0 : i32, i32
  }
  func.func @transform_6(%arg0: i32) -> (i32, i32) {
    %c0_i32 = arith.constant 0 : i32
    %c0_i32_0 = arith.constant 0 : i32
    %c0_i32_1 = arith.constant 0 : i32
    return %c0_i32, %c0_i32_0 : i32, i32
  }
  func.func @transform_7(%arg0: i32) -> (i32, i32) {
    %c0_i32 = arith.constant 0 : i32
    %c0_i32_0 = arith.constant 0 : i32
    return %arg0, %c0_i32 : i32, i32
  }
}

</mosaic_0001>

<bundles_post_ra>
// kernel: tpu_custom_call.1
= control target key start
LH: loop header
LB: loop body
LE: loop exit
PB: predicated region body
PF: predicated region fallthrough
CT: control target
= control target key end

     0   :  { %12 = vsyncpa [#allocation3], 0  ;;  %s2645_s0 = inlined_call_operand.vmem [shape: f32[16,32], index: 0, kind: input, shape index: {}]   ;;  %s2646_s1 = inlined_call_operand.vmem [shape: f32[2,1,8], index: 1, kind: input, shape index: {}]   ;;  %s2647_s2 = inlined_call_operand.hbm [shape: f32[4,32,32], index: 2, kind: input, shape index: {}]   ;;  %s2648_s3 = inlined_call_operand.vmem [shape: f32[32,64], index: 3, kind: input, shape index: {}]   ;;  %s2649_s4 = inlined_call_operand.vmem [shape: f32[64,32], index: 4, kind: input, shape index: {}]   ;;  %s2650_s5 = inlined_call_operand.vmem [shape: f32[9,32], index: 5, kind: input, shape index: {}]   ;;  %s2651_s6 = inlined_call_operand.vmem [shape: f32[1,64], index: 6, kind: input, shape index: {}]   ;;  %s2652_s7 = inlined_call_operand.hbm [shape: f32[16,32], index: 7, kind: output, shape index: {}]  }
   0x1   :  { %13 = vsyncpa [#allocation4], 0 }
   0x2   :  { %15 = vsyncpa [#allocation4 + $0x1], 0  ;;  %s2303_s24 = smov 0   ;;  %s2305_s25 = smov 0  }
   0x3   :  { %s2307_s26 = smov 0   ;;  %s2309_s27 = smov 0  }
   0x4 LB: > { %s2324_s28 = sadd.s32 4294967295, %s2251_s27   ;;  %s1832_s29 = sadd.s32 4294967294, %s2251_s27   ;;  %s2251_s27 = sphi %s2309_s27, %s2668_s27   ;;  %s2247_s26 = sphi %s2307_s26, %s2667_s26   ;;  %s2243_s25 = sphi %s2305_s25, %s2666_s25   ;;  %s2239_s24 = sphi %s2303_s24, %s2665_s24  }
   0x5   : > { %s2328_s30 = sadd.s32 1, %s2251_s27   ;;  %s185_s8 = sadd.s32 1, %s2247_s26 }
   0x6   : > { %s182_s9 = ssub.s32 %s2251_s27, %s2328_s30  ;;  %p195_p0 = scmp.ne.s32.totalorder %s2247_s26, %s2243_s25 }
   0x7   : > { %p183_p1 = scmp.eq.s32.totalorder %s182_s9, 0  ;;  %p196_p2 = scmp.eq.s32.totalorder %s2324_s28, 1 }
   0x8   : > { %p201_p3 = scmp.ne.s32.totalorder %s2243_s25, %s2239_s24  ;;  %p202_p4 = scmp.eq.s32.totalorder %s1832_s29, 1 }
   0x9   : > { %s2339_s10 = scalar_select %p183_p1, %s2247_s26, %s185_s8  }
   0xa   : > { %p2341_p5 = por %p196_p2, %p195_p0  ;;  %p2345_p6 = por %p202_p4, %p201_p3 }
   0xb   : > { %p1833_p7 = scmp.ge.s32.totalorder %s2251_s27, 1  ;;  %p209_p8 = scmp.lt.s32.totalorder %s2251_s27, 3 }
   0xc   : > { %s2656_s11 = scalar_select %p2341_p5, 1, 0 }
   0xd   : > { %s2657_s12 = scalar_select %p2345_p6, 1, 0 }
   0xe   : > { %p2653_p9 = scmp.eq.s32.totalorder %s2324_s28, 0  ;;  %p2352_p10 = pnand %p1833_p7, %p209_p8 }
   0xf   : > { %s2253_s14 = smov [#allocation2]   ;;  %s2157_s19 = scalar_lea.hbm %s2647_s2, 2048 }
  0x10   : > { %s2658_s13 = scalar_select %p2352_p10, 1, 0 }
  0x11   : > { %s221_s15 = sshll.u32 %s2253_s14, 4  ;;  %p2085_p11 = pneg %p2352_p10  ;;  %s222_s15 = int_to_ptr.vmem [resolvable:$true] %s221_s15 }
  0x12   : > { %p2158_p13 = scmp.ne.s32.totalorder %s2647_s2, %s2157_s19  ;;  %p2164_p3 = scmp.lt.u32.totalorder %s2157_s19, %s2647_s2 }
  0x13   : > { %p2360_p12 = pnand %p2653_p9, %p2085_p11 }
  0x15   : > { %p2159_p0 = pneg %p2360_p12 }
  0x17   : > { %p2160_p1 = pnand %p2159_p0, %p2158_p13 }
  0x19   : > { %p2161_p2 = pneg %p2160_p1 }
  0x1b   : > { %p2166_p4 = pnand %p2164_p3, %p2161_p2 }
  0x1d   : > { %2169 = shalt.err (!%p2166_p4)
}
  0x1e   : > { %s2170_s29 = scalar_lea.vmem %s222_s15, 2048  ;;  %p2178_p9 = scmp.lt.s32.totalorder %s222_s15, %s222_s15 }
  0x1f   : > { %p2171_p7 = scmp.ne.s32.totalorder %s222_s15, %s2170_s29  ;;  %p2179_p6 = scmp.lt.s32.totalorder %s2170_s29, %s2170_s29 }
  0x21   : > { %p2173_p8 = pnand %p2171_p7, %p2159_p0  ;;  %p2180_p5 = por %p2179_p6, %p2178_p9 }
  0x23   : > { %p2174_p11 = pneg %p2173_p8 }
  0x25   : > { %p2181_p10 = pnand %p2180_p5, %p2174_p11 }
  0x27   : > { %2184 = shalt.err (!%p2181_p10)
}
  0x28   : > { %s2254_s8 = smov 128   ;;  %s2255_s9 = smov 8  }
  0x29   : > { %2088 = dma.hbm_to_vmem [thread:$0]  (!%p2360_p12), %s2647_s2, 2048, %s222_s15, [#allocation3], %s2254_s8, %s2254_s8, %s2255_s9  }
  0x2a   : > { %p2660_p13 = scmp.ne.s32.totalorder %s2658_s13, 0 }
  0x2b   : > { %p2661_p1 = scmp.eq.s32.totalorder (!%p2660_p13), %s2324_s28, 0 }
  0x2c   : > { %262 = sbr.rel (%p2660_p13) target bundleno = 3698 (0xe72), region = 48 }
  0x33   : > { %2230 = dma.done.wait (%p2661_p1), [#allocation3], 2048   ;;  %p2662_p0 = pmov %p2661_p1 }
  0x34   : > { %p296_p5 = scmp.lt.s32.totalorder %s2324_s28, 1  ;;  %vm307_vm0 = vcmask 261120   ;;  %v332_v7 = vld [vmem:[#allocation2] sm:$0xff]  ;;  %v333_v8 = vld [vmem:[#allocation2 + $0x8] sm:$0xff]  ;;  %v2256_v10 = vmov 0.0|0.0   ;;  %v334_v13 = vld [vmem:[#allocation2 + $0x10] sm:$0xff]  ;;  %v322_v23 = vlaneseq }
  0x35   : > { %2232 = vsyncadd (%p2662_p0), [#allocation3], 4294965248  ;;  %v337_v9 = vld [vmem:[#allocation2 + $0x20] sm:$0xff]  ;;  %2043 = vmatprep.subr.bf16.mxu0 %v2256_v10  ;;  %v2044_v11 = vpack.c.bf16 %v333_v8, %v332_v7  ;;  %2049 = vmatprep.subr.bf16.mxu1 %v2256_v10  ;;  %v338_v12 = vld [vmem:[#allocation2 + $0x28] sm:$0xff]  ;;  %vm2257_vm1 = vmmov 0   ;;  %v2258_v18 = vmov 0.0  }
  0x36   : > { %s2388_s18 = scalar_select %p296_p5, %s2324_s28, 1  ;;  %v335_v14 = vld [vmem:[#allocation2 + $0x18] sm:$0xff]  ;;  %v2050_v15 = vpack.c.bf16 %v338_v12, %v337_v9  ;;  %v339_v16 = vld [vmem:[#allocation2 + $0x30] sm:$0xff]  ;;  %1928 = vmatprep.mubr.msk.f32.mxu0 %vm2257_vm1, %v2258_v18  ;;  %1939 = vmatprep.mubr.msk.f32.mxu1 %vm2257_vm1, %v2258_v18  ;;  %v2410_v25 = vshrl.u32 %v322_v23, 7  ;;  %v2416_v27 = vld [vmem:[%s2650_s5] sm:$0xff]  ;;  %vm586_vm2 = vcmask 64512  }
  0x37   : > { %v340_v17 = vld [vmem:[#allocation2 + $0x38] sm:$0xff]  ;;  %2045 = vmatpush3.bf16.msra.mxu0 %v2044_v11  ;;  %v2047_v19 = vpack.c.bf16 %v335_v14, %v334_v13  ;;  %v342_v33 = vld [vmem:[#allocation2 + $0x40] sm:$0xff]  ;;  %v343_v34 = vld [vmem:[#allocation2 + $0x48] sm:$0xff]  ;;  %s2259_s22 = smov 120   ;;  %s2260_s9 = smov 112   ;;  %vm1662_vm4 = vcmask 523264  }
  0x38   : > { %s1839_s16 = sshll.u32 %s2388_s18, 3  ;;  %2051 = vmatpush3.bf16.msra.mxu1 %v2050_v15  ;;  %2046 = vmatprep.subr.bf16.mxu0 %v2256_v10  ;;  %v2053_v20 = vpack.c.bf16 %v340_v17, %v339_v16  ;;  %v324_v26 = vsub.s32 0, %v2410_v25  ;;  %v329_v28 = vsub.s32 1, %v2410_v25  ;;  %v2056_v36 = vpack.c.bf16 %v343_v34, %v342_v33  ;;  %v344_v38 = vld [vmem:[#allocation2 + $0x50] sm:$0xff]  ;;  %v345_v39 = vld [vmem:[#allocation2 + $0x58] sm:$0xff]  ;;  %s302_s8 = scalar_lea.vmem %s2646_s1, %s2388_s18 }
  0x39   : > { %s299_s15 = scalar_lea.vmem %s2645_s0, %s1839_s16  ;;  %2052 = vmatprep.subr.bf16.mxu1 %v2256_v10  ;;  %v2059_v40 = vpack.c.bf16 %v345_v39, %v344_v38  ;;  %v353_v41 = vsub.s32 2, %v2410_v25  ;;  %v431_v42 = vsub.s32 3, %v2410_v25  ;;  %v505_v51 = vsub.s32 4, %v2410_v25  ;;  %v577_v59 = vld [vmem:[%s302_s8] sm:$0x1]  ;;  %s2261_s14 = smov 104  }
  0x3a   : > { %v2394_v0 = vld [vmem:[%s299_s15] sm:$0xff]  ;;  %v325_v29 = vrot.slane %v2416_v27, %v324_v26  ;;  %v330_v32 = vrot.slane %v2416_v27, %v329_v28  ;;  %vm578_vm3 = vcmp.eq.f32.partialorder %v577_v59, 0.0  ;;  %s1864_s16 = sshll.u32 %s2324_s28, 7  ;;  %p2663_p9 = scmp.ne.s32.totalorder %s2656_s11, 0 }
  0x3b   : > { %v308_v1 = vsel %vm307_vm0, %v2394_v0, 0.0  ;;  %2048 = vmatpush3.bf16.msra.mxu0 %v2047_v19  ;;  %v354_v43 = vrot.slane %v2416_v27, %v353_v41  ;;  %v432_v44 = vrot.slane %v2416_v27, %v431_v42  ;;  %v506_v53 = vrot.slane %v2416_v27, %v505_v51  ;;  %s2602_s21 = scalar_lea.hbm %s2652_s7, %s1864_s16  ;;  %s2262_s23 = smov [#allocation5]  }
  0x3c   : > { %309 = vadd.xlane.f32.xlu0 %v308_v1  ;;  %2054 = vmatpush3.bf16.msra.mxu1 %v2053_v20  ;;  %v579_v60 = vsel %vm578_vm3, -1e+09, %v2258_v18  ;;  %s2189_s29 = sshll.u32 %s2262_s23, 4  ;;  %s2190_s29 = int_to_ptr.vmem [resolvable:$false] %s2189_s29 }
  0x3d   : > { %2055 = vmatprep.subr.bf16.mxu0 %v2256_v10  ;;  %1958 = vmatprep.subr.mxu1 %v2258_v18  ;;  %v2467_v61 = vrot.slane %v579_v60, %v324_v26  ;;  %s2191_s8 = scalar_lea.vmem %s2190_s29, 256 }
  0xc9   : > { %v310_v2 = vpop.xlane.xlu0 %309 }
  0xca   : > { %v312_v3 = vmul.f32 0.03125, %v310_v2 }
  0xcc   : > { %v313_v4 = vsub.f32 %v2394_v0, %v312_v3 }
  0xce   : > { %v314_v5 = vmul.f32 %v313_v4, %v313_v4 }
  0xd0   : > { %v315_v6 = vsel %vm307_vm0, %v314_v5, 0.0 }
  0xd1   : > { %316 = vadd.xlane.f32.xlu0 %v315_v6 }
 0x15e   : > { %v317_v21 = vpop.xlane.xlu0 %316 }
 0x15f   : > { %v318_v22 = vmul.f32 0.03125, %v317_v21 }
 0x161   : > { %v319_v24 = vadd.f32 1e-05, %v318_v22  ;;  %v348_v22 = vld [vmem:[#allocation2 + $0x68] sm:$0xff] }
 0x163   : > { %2137 = vrsqrt.f32 %v319_v24 }
 0x16d   : > { %v2138_v30 = vpop.eup %2137 }
 0x16e   : > { %v321_v31 = vmul.f32 %v2138_v30, %v313_v4 }
 0x170   : > { %v326_v35 = vmul.f32 %v325_v29, %v321_v31  ;;  %v347_v29 = vld [vmem:[#allocation2 + $0x60] sm:$0xff] }
 0x172   : > { %v331_v37 = vadd.f32 %v330_v32, %v326_v35 }
 0x174   : > { %1929 = vmatmul.mubr.msk.f32.vlgmr.msra.gmra.mrb[0].mxu0 %vm307_vm0, %v331_v37  ;;  %1940 = vmatmul.mubr.msk.f32.vlgmr.msra.gmra.mrb[0].mxu1 %vm307_vm0, %v331_v37 }
 0x175   : > { %2057 = vmatpush3.bf16.msra.mxu0 %v2056_v36  ;;  %1950 = vmatprep.mubr.msk.f32.mxu0 %vm2257_vm1, %v2258_v18 }
 0x176   : > { %2058 = vmatprep.subr.bf16.mxu0 %v2256_v10  ;;  %1960 = vmatprep.mubr.msk.f32.mxu1 %vm2257_vm1, %v2258_v18 }
 0x179   : > { %2060 = vmatpush3.bf16.msra.mxu0 %v2059_v40 }
 0x17a   : > { %1953 = vmatprep.subr.mxu0 %v2258_v18 }
 0x17c   : > { %1951 = vmatmul.mubr.msk.f32.vlgmr.msra.gmra.mrb[2].mxu0 %vm307_vm0, %v331_v37 }
 0x17d   : > { %1955 = vmatprep.mubr.msk.f32.mxu0 %vm2257_vm1, %v2258_v18 }
 0x247   : > { %v424_v45 = vpop.f32.mrb[0].mxu0  ;;  %v499_v46 = vpop.f32.mrb[0].mxu1 }
 0x248   : > { %v425_v47 = vadd.f32 %v424_v45, %v354_v43  ;;  %v2436_v48 = vadd.f32 %v499_v46, %v432_v44  ;;  %v1930_v49 = vpop.f32.mrb[1].mxu0  ;;  %v1941_v50 = vpop.f32.mrb[1].mxu1 }
 0x24a   : > { %v2439_v52 = vmul.f32 0.35355338, %v425_v47  ;;  %749 = vrot.lane.b32.xlu1 %v2436_v48, %s2259_s22  ;;  %1954 = vmatpush3.xpose.msk.msra.mxu0 %vm586_vm2, %v2436_v48 }
 0x24b   : > { %1963 = vmatprep.subr.mxu0 %v2258_v18 }
 0x24d   : > { %1956 = vmatmul.mubr.msk.f32.vlgmr.msra.gmra.mrb[4].mxu0 %vm586_vm2, %v2439_v52 }
 0x24e   : > { %747 = vrot.lane.b32.xlu1 %v2439_v52, %s2259_s22  ;;  %1965 = vmatprep.mubr.msk.f32.mxu0 %vm2257_vm1, %v2258_v18 }
 0x24f   : > { %v573_v54 = vpop.f32.mrb[2].mxu0 }
 0x250   : > { %v2453_v55 = vadd.f32 %v573_v54, %v506_v53  ;;  %v1952_v56 = vpop.f32.mrb[3].mxu0 }
 0x252   : > { %1959 = vmatpush3.msra.mxu1 %v2453_v55 }
 0x253   : > { %1968 = vmatprep.subr.mxu1 %v2258_v18 }
 0x2bc   : > { %v750_v57 = vpop.permute.xlu1 %749 }
 0x2bd   : > { %1964 = vmatpush3.xpose.msk.msra.mxu0 %vm586_vm2, %v750_v57 }
 0x2be   : > { %1973 = vmatprep.subr.mxu0 %v2258_v18 }
 0x2c0   : > { %v748_v58 = vpop.permute.xlu1 %747 }
 0x2c1   : > { %1966 = vmatmul.mubr.msk.f32.vlgmr.msra.gmra.mrb[6].mxu0 %vm586_vm2, %v748_v58 }
 0x2c2   : > { %1975 = vmatprep.mubr.msk.f32.mxu0 %vm2257_vm1, %v2258_v18  ;;  %1974 = vmatpush3.msra.mxu0 %v348_v22 }
 0x2c3   : > { %1983 = vmatprep.subr.mxu0 %v2258_v18 }
 0x320   : > { %v659_v62 = vpop.f32.mrb[4].mxu0 }
 0x321   : > { %v660_v63 = vadd.f32 %v659_v62, %v2467_v61  ;;  %v1957_v1 = vpop.f32.mrb[5].mxu0 }
 0x323   : > { %v663_v2 = vsel %vm586_vm2, %v660_v63, -inf }
 0x324   : > { %664 = vmax.xlane.f32.xlu0 %v663_v2 }
 0x394   : > { %v821_v3 = vpop.f32.mrb[6].mxu0 }
 0x395   : > { %v822_v4 = vadd.f32 %v821_v3, %v2467_v61  ;;  %v1967_v5 = vpop.f32.mrb[7].mxu0 }
 0x397   : > { %v825_v6 = vsel %vm586_vm2, %v822_v4, -inf }
 0x398   : > { %826 = vmax.xlane.f32.xlu1 %v825_v6 }
 0x3a9   : > { %1059 = vrot.lane.b32.xlu1 %v2439_v52, %s2260_s9 }
 0x3b1   : > { %v665_v7 = vpop.xlane.xlu0 %664 }
 0x3b2   : > { %v666_v8 = vsub.f32 %v660_v63, %v665_v7 }
 0x3b4   : > { %v667_v9 = vmul.f32 1.442695, %v666_v8 }
 0x3b6   : > { %2139 = vpow2.f32 %v667_v9 }
 0x3c0   : > { %v2140_v11 = vpop.eup %2139 }
 0x3c1   : > { %v669_v12 = vsel %vm586_vm2, %v2140_v11, 0.0 }
 0x3c2   : > { %670 = vadd.xlane.f32.xlu0 %v669_v12 }
 0x425   : > { %v827_v13 = vpop.xlane.xlu1 %826 }
 0x426   : > { %v828_v14 = vsub.f32 %v822_v4, %v827_v13 }
 0x428   : > { %v829_v15 = vmul.f32 1.442695, %v828_v14 }
 0x429   : > { %v1060_v35 = vpop.permute.xlu1 %1059 }
 0x42a   : > { %2141 = vpow2.f32 %v829_v15 }
 0x434   : > { %v2142_v16 = vpop.eup %2141 }
 0x435   : > { %v831_v17 = vsel %vm586_vm2, %v2142_v16, 0.0 }
 0x436   : > { %832 = vadd.xlane.f32.xlu0 %v831_v17 }
 0x44c   : > { %837 = vrot.lane.b32.xlu0 %v2453_v55, %s2259_s22 }
 0x44f   : > { %v671_v19 = vpop.xlane.xlu0 %670 }
 0x450   : > { %2143 = vrcp.f32 %v671_v19  ;;  %1061 = vrot.lane.b32.xlu0 %v2436_v48, %s2260_s9 }
 0x45a   : > { %v2144_v20 = vpop.eup %2143 }
 0x45b   : > { %v673_v21 = vmul.f32 %v2144_v20, %v2140_v11 }
 0x45d   : > { %1961 = vmatmul.mubr.msk.f32.vlgmr.msra.gmra.mrb[2].mxu1 %vm586_vm2, %v673_v21 }
 0x45e   : > { %1970 = vmatprep.mubr.msk.f32.mxu1 %vm2257_vm1, %v2258_v18 }
 0x4c3   : > { %v833_v23 = vpop.xlane.xlu0 %832 }
 0x4c4   : > { %2145 = vrcp.f32 %v833_v23 }
 0x4c7   : > { %v838_v24 = vpop.permute.xlu0 %837 }
 0x4c8   : > { %1969 = vmatpush3.msra.mxu1 %v838_v24 }
 0x4c9   : > { %1978 = vmatprep.subr.mxu1 %v2258_v18 }
 0x4cb   : > { %v1062_v33 = vpop.permute.xlu0 %1061 }
 0x4ce   : > { %v2146_v26 = vpop.eup %2145 }
 0x4cf   : > { %v835_v28 = vmul.f32 %v2146_v26, %v2142_v16  ;;  %v1540_v16 = vsub.s32 5, %v2410_v25 }
 0x4d1   : > { %1971 = vmatmul.mubr.msk.f32.vlgmr.msra.gmra.mrb[4].mxu1 %vm586_vm2, %v835_v28  ;;  %v1541_v20 = vrot.slane %v2416_v27, %v1540_v16 }
 0x4d2   : > { %1979 = vmatpush3.msra.mxu1 %v347_v29  ;;  %1980 = vmatprep.mubr.msk.f32.mxu1 %vm2257_vm1, %v2258_v18 }
 0x4d3   : > { %1988 = vmatprep.subr.mxu1 %v2258_v18 }
 0x530   : > { %v743_v30 = vpop.f32.mrb[2].mxu1 }
 0x531   : > { %v1962_v31 = vpop.f32.mrb[3].mxu1  ;;  %1981 = vmatmul.mubr.msk.f32.vlgmr.msra.gmra.mrb[6].mxu1 %vm586_vm2, %v743_v30 }
 0x532   : > { %1990 = vmatprep.mubr.msk.f32.mxu1 %vm2257_vm1, %v2258_v18  ;;  %v1566_v31 = vld [vmem:[%s2648_s3] sm:$0xff] }
 0x5a4   : > { %v909_v32 = vpop.f32.mrb[4].mxu1 }
 0x5a5   : > { %v1972_v34 = vpop.f32.mrb[5].mxu1  ;;  %1976 = vmatmul.mubr.msk.f32.vlgmr.msra.gmra.mrb[8].mxu0 %vm586_vm2, %v909_v32 }
 0x5a6   : > { %1984 = vmatpush3.xpose.msk.msra.mxu0 %vm586_vm2, %v1062_v33  ;;  %1985 = vmatprep.mubr.msk.f32.mxu0 %vm2257_vm1, %v2258_v18  ;;  %v1568_v33 = vld [vmem:[%s2648_s3 + $0x10] sm:$0xff]  ;;  %v1569_v34 = vld [vmem:[%s2648_s3 + $0x18] sm:$0xff] }
 0x5a7   : > { %1993 = vmatprep.subr.mxu0 %v2258_v18 }
 0x5a9   : > { %1986 = vmatmul.mubr.msk.f32.vlgmr.msra.gmra.mrb[10].mxu0 %vm586_vm2, %v1060_v35  ;;  %v2065_v35 = vpack.c.bf16 %v1569_v34, %v1568_v33 }
 0x5aa   : > { %1995 = vmatprep.mubr.msk.f32.mxu0 %vm2257_vm1, %v2258_v18 }
 0x604   : > { %v1055_v36 = vpop.f32.mrb[6].mxu1 }
 0x605   : > { %v1982_v37 = vpop.f32.mrb[7].mxu1 }
 0x606   : > { %v1651_v37 = vld [vmem:[%s2649_s4 + $0x8] sm:$0xff] }
 0x678   : > { %v982_v38 = vpop.f32.mrb[8].mxu0 }
 0x679   : > { %v1056_v39 = vadd.f32 %v1055_v36, %v982_v38  ;;  %v1977_v40 = vpop.f32.mrb[9].mxu0  ;;  %v1650_v36 = vld [vmem:[%s2649_s4] sm:$0xff]  ;;  %v1652_v38 = vld [vmem:[%s2649_s4 + $0x10] sm:$0xff] }
 0x67a   : > { %v1653_v40 = vld [vmem:[%s2649_s4 + $0x18] sm:$0xff] }
 0x67c   : > { %v1133_v41 = vpop.f32.mrb[10].mxu0 }
 0x67d   : > { %v1134_v42 = vadd.f32 %v1133_v41, %v2467_v61  ;;  %v1987_v43 = vpop.f32.mrb[11].mxu0  ;;  %v2071_v41 = vpack.c.bf16 %v1653_v40, %v1652_v38 }
 0x67e   : > { %v1655_v43 = vld [vmem:[%s2649_s4 + $0x28] sm:$0xff] }
 0x67f   : > { %v1137_v44 = vsel %vm586_vm2, %v1134_v42, -inf }
 0x680   : > { %1138 = vmax.xlane.f32.xlu0 %v1137_v44 }
 0x696   : > { %1148 = vrot.lane.b32.xlu0 %v2453_v55, %s2260_s9  ;;  %s293_s9 = sand.u32 1, %s2243_s25  }
 0x697   : > { %s1739_s22 = scalar_lea.sflag [#allocation4], %s293_s9 }
 0x69a   : > { %1298 = vrot.lane.b32.xlu0 %v2439_v52, %s2261_s14 }
 0x70d   : > { %v1139_v45 = vpop.xlane.xlu0 %1138 }
 0x70e   : > { %v1140_v46 = vsub.f32 %v1134_v42, %v1139_v45  ;;  %v1654_v42 = vld [vmem:[%s2649_s4 + $0x20] sm:$0xff] }
 0x70f   : > { %v2074_v44 = vpack.c.bf16 %v1655_v43, %v1654_v42 }
 0x710   : > { %v1141_v47 = vmul.f32 1.442695, %v1140_v46 }
 0x711   : > { %v1149_v49 = vpop.permute.xlu0 %1148 }
 0x712   : > { %2147 = vpow2.f32 %v1141_v47  ;;  %1989 = vmatpush3.msra.mxu1 %v1149_v49  ;;  %v1558_v49 = vsub.s32 6, %v2410_v25 }
 0x713   : > { %1998 = vmatprep.subr.mxu1 %v2258_v18 }
 0x715   : > { %v1299_v57 = vpop.permute.xlu0 %1298 }
 0x71c   : > { %v2148_v50 = vpop.eup %2147 }
 0x71d   : > { %v1143_v51 = vsel %vm586_vm2, %v2148_v50, 0.0 }
 0x71e   : > { %1144 = vadd.xlane.f32.xlu1 %v1143_v51  ;;  %v1559_v51 = vrot.slane %v2416_v27, %v1558_v49 }
 0x72f   : > { %1300 = vrot.lane.b32.xlu1 %v2436_v48, %s2261_s14  ;;  %v349_v48 = vld [vmem:[#allocation2 + $0x70] sm:$0xff] }
 0x730   : > { %1994 = vmatpush3.msra.mxu0 %v349_v48 }
 0x731   : > { %2003 = vmatprep.subr.mxu0 %v2258_v18 }
 0x7ab   : > { %v1145_v53 = vpop.xlane.xlu1 %1144 }
 0x7ac   : > { %2149 = vrcp.f32 %v1145_v53 }
 0x7af   : > { %v1301_v52 = vpop.permute.xlu1 %1300 }
 0x7b6   : > { %v2150_v54 = vpop.eup %2149 }
 0x7b7   : > { %v1147_v56 = vmul.f32 %v2150_v54, %v2148_v50  ;;  %v1563_v50 = vsub.s32 7, %v2410_v25  ;;  %v1657_v25 = vld [vmem:[%s2649_s4 + $0x38] sm:$0xff] }
 0x7b9   : > { %1991 = vmatmul.mubr.msk.f32.vlgmr.msra.gmra.mrb[8].mxu1 %vm586_vm2, %v1147_v56  ;;  %v1564_v56 = vrot.slane %v2416_v27, %v1563_v50 }
 0x7ba   : > { %1999 = vmatpush3.xpose.msk.msra.mxu1 %vm586_vm2, %v1301_v52  ;;  %2000 = vmatprep.mubr.msk.f32.mxu1 %vm2257_vm1, %v2258_v18 }
 0x7bb   : > { %2008 = vmatprep.subr.mxu1 %v2258_v18 }
 0x7bd   : > { %2001 = vmatmul.mubr.msk.f32.vlgmr.msra.gmra.mrb[10].mxu1 %vm586_vm2, %v1299_v57 }
 0x7be   : > { %2010 = vmatprep.mubr.msk.f32.mxu1 %vm2257_vm1, %v2258_v18 }
 0x88c   : > { %v1220_v58 = vpop.f32.mrb[8].mxu1 }
 0x88d   : > { %v1992_v59 = vpop.f32.mrb[9].mxu1  ;;  %1996 = vmatmul.mubr.msk.f32.vlgmr.msra.gmra.mrb[12].mxu0 %vm586_vm2, %v1220_v58  ;;  %v1859_v58 = vld [vmem:[%s2651_s6] ss:$0 sm:$0xff] }
 0x88e   : > { %2005 = vmatprep.mubr.msk.f32.mxu0 %vm2257_vm1, %v2258_v18 }
 0x890   : > { %v1372_v60 = vpop.f32.mrb[10].mxu1 }
 0x891   : > { %v1373_v62 = vadd.f32 %v1372_v60, %v2467_v61  ;;  %v2002_v63 = vpop.f32.mrb[11].mxu1  ;;  %v350_v61 = vld [vmem:[#allocation2 + $0x78] sm:$0xff] }
 0x892   : > { %2009 = vmatpush3.msra.mxu1 %v350_v61  ;;  %v1861_v63 = vld [vmem:[%s2650_s5 + $0x8] ss:$0 sm:$0xff] }
 0x893   : > { %v1376_v1 = vsel %vm586_vm2, %v1373_v62, -inf  ;;  %2067 = vmatprep.subr.bf16.mxu1 %v2256_v10 }
 0x894   : > { %1377 = vmax.xlane.f32.xlu0 %v1376_v1 }
 0x8aa   : > { %1387 = vrot.lane.b32.xlu0 %v2453_v55, %s2261_s14  ;;  %s1838_s14 = sshll.u32 %s293_s9, 3 }
 0x8ab   : > { %s295_s19 = scalar_lea.vmem [#allocation5], %s1838_s14 }
 0x8ac   : > { %s1752_s20 = sshll.u32 %s295_s19, 4  ;;  %s2604_s20 = int_to_ptr.vmem [resolvable:$true] %s1752_s20 }
 0x8ad   : > { %s2185_s28 = scalar_lea.vmem %s2604_s20, 128  ;;  %p2192_p2 = scmp.lt.s32.totalorder %s2604_s20, %s2190_s29 }
 0x8ae   : > { %p2186_p6 = scmp.ne.s32.totalorder %s2604_s20, %s2185_s28  ;;  %p2193_p3 = scmp.lt.s32.totalorder %s2191_s8, %s2185_s28 }
 0x8b0   : > { %p2187_p10 = pnand %p2186_p6, %p2663_p9  ;;  %p2194_p4 = por %p2193_p3, %p2192_p2 }
 0x8b2   : > { %p2188_p12 = pneg %p2187_p10 }
 0x8b4   : > { %p2195_p7 = pnand %p2194_p4, %p2188_p12 }
 0x921   : > { %v1378_v2 = vpop.xlane.xlu0 %1377 }
 0x922   : > { %v1379_v3 = vsub.f32 %v1373_v62, %v1378_v2 }
 0x924   : > { %v1380_v4 = vmul.f32 1.442695, %v1379_v3 }
 0x925   : > { %v1388_v5 = vpop.permute.xlu0 %1387 }
 0x926   : > { %2151 = vpow2.f32 %v1380_v4  ;;  %2004 = vmatpush3.msra.mxu0 %v1388_v5 }
 0x927   : > { %2061 = vmatprep.subr.bf16.mxu0 %v2256_v10 }
 0x930   : > { %v2152_v6 = vpop.eup %2151 }
 0x931   : > { %v1382_v7 = vsel %vm586_vm2, %v2152_v6, 0.0 }
 0x932   : > { %1383 = vadd.xlane.f32.xlu1 %v1382_v7 }
 0x960   : > { %v1293_v8 = vpop.f32.mrb[12].mxu0 }
 0x961   : > { %v1297_v9 = vadd.f32 %v1293_v8, %v1056_v39  ;;  %v1997_v11 = vpop.f32.mrb[13].mxu0  ;;  %v2068_v39 = vpack.c.bf16 %v1651_v37, %v1650_v36 }
 0x9bf   : > { %v1384_v55 = vpop.xlane.xlu1 %1383 }
 0x9c0   : > { %2153 = vrcp.f32 %v1384_v55 }
 0x9ca   : > { %v2154_v12 = vpop.eup %2153 }
 0x9cb   : > { %v1386_v13 = vmul.f32 %v2154_v12, %v2152_v6 }
 0x9cd   : > { %2006 = vmatmul.mubr.msk.f32.vlgmr.msra.gmra.mrb[14].mxu0 %vm586_vm2, %v1386_v13 }
 0x9ce   : > { %2021 = vmatprep.mubr.msk.f32.mxu0 %vm2257_vm1, %v2258_v18 }
 0xaa0   : > { %v1459_v14 = vpop.f32.mrb[14].mxu0 }
 0xaa1   : > { %v2007_v15 = vpop.f32.mrb[15].mxu0  ;;  %2011 = vmatmul.mubr.msk.f32.vlgmr.msra.gmra.mrb[12].mxu1 %vm586_vm2, %v1459_v14 }
 0xaa2   : > { %2040 = vmatprep.mubr.msk.f32.mxu1 %vm2257_vm1, %v2258_v18  ;;  %2069 = vmatpush3.bf16.msra.mxu1 %v2068_v39 }
 0xaa3   : > { %2070 = vmatprep.subr.bf16.mxu1 %v2256_v10 }
 0xaa6   : > { %2072 = vmatpush3.bf16.msra.mxu1 %v2071_v41 }
 0xaa7   : > { %2073 = vmatprep.subr.bf16.mxu1 %v2256_v10 }
 0xaaa   : > { %2075 = vmatpush3.bf16.msra.mxu1 %v2074_v44 }
 0xaab   : > { %2076 = vmatprep.subr.bf16.mxu1 %v2256_v10 }
 0xb74   : > { %v1532_v17 = vpop.f32.mrb[12].mxu1 }
 0xb75   : > { %v1536_v19 = vadd.f32 %v1532_v17, %v1297_v9  ;;  %v2012_v21 = vpop.f32.mrb[13].mxu1 }
 0xb77   : > { %v1537_v22 = vadd.f32 %v1536_v19, %v2394_v0  ;;  %v1567_v0 = vld [vmem:[%s2648_s3 + $0x8] sm:$0xff] }
 0xb78   : > { %v2062_v32 = vpack.c.bf16 %v1567_v0, %v1566_v31 }
 0xb79   : > { %v2539_v23 = vadd.f32 %v1541_v20, %v1537_v22 }
 0xb7a   : > { %2063 = vmatpush3.bf16.msra.mxu0 %v2062_v32 }
 0xb7b   : > { %v1543_v24 = vsel %vm307_vm0, %v2539_v23, 0.0  ;;  %2064 = vmatprep.subr.bf16.mxu0 %v2256_v10  ;;  %v1656_v10 = vld [vmem:[%s2649_s4 + $0x30] sm:$0xff] }
 0xb7c   : > { %1544 = vadd.xlane.f32.xlu1 %v1543_v24  ;;  %v2077_v48 = vpack.c.bf16 %v1657_v25, %v1656_v10 }
 0xb7e   : > { %2066 = vmatpush3.bf16.msra.mxu0 %v2065_v35  ;;  %2078 = vmatpush3.bf16.msra.mxu1 %v2077_v48 }
 0xc09   : > { %v1545_v26 = vpop.xlane.xlu1 %1544 }
 0xc0a   : > { %v1546_v28 = vmul.f32 0.03125, %v1545_v26 }
 0xc0c   : > { %v1547_v29 = vsub.f32 %v2539_v23, %v1546_v28 }
 0xc0e   : > { %v1548_v18 = vmul.f32 %v1547_v29, %v1547_v29 }
 0xc10   : > { %v1549_v30 = vsel %vm307_vm0, %v1548_v18, 0.0 }
 0xc11   : > { %1550 = vadd.xlane.f32.xlu1 %v1549_v30 }
 0xc9e   : > { %v1551_v45 = vpop.xlane.xlu1 %1550 }
 0xc9f   : > { %v1552_v46 = vmul.f32 0.03125, %v1551_v45 }
 0xca1   : > { %v1553_v47 = vadd.f32 1e-05, %v1552_v46 }
 0xca3   : > { %2155 = vrsqrt.f32 %v1553_v47 }
 0xcad   : > { %v2156_v53 = vpop.eup %2155 }
 0xcae   : > { %v1555_v54 = vmul.f32 %v2156_v53, %v1547_v29 }
 0xcb0   : > { %v1560_v52 = vmul.f32 %v1559_v51, %v1555_v54 }
 0xcb2   : > { %v1565_v57 = vadd.f32 %v1564_v56, %v1560_v52 }
 0xcb4   : > { %2022 = vmatmul.mubr.msk.f32.vlgmr.msra.gmra.mrb[16].mxu0 %vm307_vm0, %v1565_v57 }
 0xd87   : > { %v1645_v27 = vpop.f32.mrb[16].mxu0 }
 0xd88   : > { %v1646_v59 = vadd.f32 %v1859_v58, %v1645_v27  ;;  %v2023_v60 = vpop.f32.mrb[17].mxu0 }
 0xd8a   : > { %v1649_v62 = vmax.f32 %v1646_v59, 0.0 }
 0xd8c   : > { %2041 = vmatmul.mubr.msk.f32.vlgmr.msra.gmra.mrb[14].mxu1 %vm1662_vm4, %v1649_v62 }
 0xe5f   : > { %v1732_v1 = vpop.f32.mrb[14].mxu1 }
 0xe60   : > { %v1733_v2 = vadd.f32 %v1861_v63, %v1732_v1  ;;  %v2042_v3 = vpop.f32.mrb[15].mxu1 }
 0xe62   : > { %v1736_v4 = vadd.f32 %v1733_v2, %v2539_v23 }
 0xe64   : > { %1737 = vst.msk [vmem:[%s295_s19] sm:$0xff] %vm307_vm0, %v1736_v4 }
 0xe65   : > { %2198 = shalt.err (!%p2195_p7)
}
 0xe66   : > { %s2199_s9 = scalar_lea.hbm %s2602_s21, 128  ;;  %s2203_s18 = scalar_lea.hbm %s2652_s7, 256 }
 0xe67   : > { %p2200_p8 = scmp.ne.s32.totalorder %s2602_s21, %s2199_s9  ;;  %p2204_p1 = scmp.lt.u32.totalorder %s2602_s21, %s2652_s7 }
 0xe68   : > { %p2205_p0 = scmp.lt.u32.totalorder %s2203_s18, %s2199_s9  ;;  %p2207_p6 = scmp.lt.u32.totalorder %s2199_s9, %s2602_s21 }
 0xe69   : > { %p2201_p11 = pnand %p2200_p8, %p2663_p9 }
 0xe6a   : > { %p2206_p5 = por %p2205_p0, %p2204_p1 }
 0xe6b   : > { %p2202_p13 = pneg %p2201_p11 }
 0xe6c   : > { %p2208_p10 = por %p2207_p6, %p2206_p5 }
 0xe6e   : > { %p2209_p12 = pnand %p2208_p10, %p2202_p13 }
 0xe70   : > { %2212 = shalt.err (!%p2209_p12)
}
 0xe71   : > { %2083 = dma.vmem_to_hbm [thread:$0]  (%p2663_p9), %s2604_s20, 128, %s2602_s21, %s1739_s22  }
 0xe72 PF: > { %p2095_p2 = scmp.ge.s32.totalorder %s2251_s27, 2  ;;  %s1764_s15 = sand.u32 1, %s2239_s24  }
 0xe73   : > { %p2664_p3 = scmp.ne.s32.totalorder %s2657_s12, 0  ;;  %s1765_s13 = scalar_lea.sflag [#allocation4], %s1764_s15 }
 0xe75   : > { %p2090_p4 = pnand %p2095_p2, %p2664_p3 }
 0xe77   : > { %2234 = dma.done.wait (!%p2090_p4), %s1765_s13, 128  }
 0xe78   : > { %2236 = vsyncadd (!%p2090_p4), %s1765_s13, 4294967168  ;;  %p18_p7 = scmp.ge.s32.totalorder %s2328_s30, 4   ;;  %s2665_s24 = smov %s2243_s25 }
 0xe79   : > { %s2666_s25 = smov %s2247_s26  ;;  %s2667_s26 = smov %s2339_s10 }
 0xe7a   : > { %s2668_s27 = smov %s2328_s30  ;;  %20 = sbr.rel (!%p18_p7) target bundleno = 4 (0x4), region = 94 }
 0xe81   :  { %1770 = vsyncpa [#allocation3], 1 }
 0xe82   :  { %1772 = vsyncpa [#allocation3 + $0x1], 1 }
 0xe83   :  { %1773 = vsyncpa [#allocation4], 1 }
 0xe84   :  { %1775 = vsyncpa [#allocation4 + $0x1], 1 }

</bundles_post_ra>
